<compile_context>
chip_gen: v7x
topology: tpu7x:2x2x1
jax: 0.10.0
libtpu: 0.0.40
codegen_flags: <defaults>
</compile_context>

<pallas_src>
import functools
import math

import jax
import jax.numpy as jnp
from jax import lax
from jax.experimental import pallas as pl
from jax.experimental.pallas import tpu as pltpu

_MIB = 1024 * 1024


def bgat_kernel(x_ref, w_ref, a_ref, beta_ref, out_ref, *,
                alpha, n_nodes, mxu_dtype, flat_out, approx_recip):
    """One grid step: Bblk batch elements of the BGAT forward."""
    N = n_nodes
    BN, C = x_ref.shape
    Bblk = BN // N
    F = w_ref.shape[1]

    # --- projection: one dense MXU matmul over all blocked batch rows -------
    x2d = x_ref[...]                                    # (Bblk*N, C), 2-D from wrapper
    w = w_ref[...]
    hf = jnp.dot(x2d.astype(mxu_dtype), w.astype(mxu_dtype),
                 preferred_element_type=jnp.float32)    # (Bblk*N, F), f32 acc
    h = hf.reshape(Bblk, N, F)                          # leading-dim split

    a = a_ref[...].astype(jnp.float32)                  # (2, F): rows [a1, a2]
    a1 = a[0:1, :]
    a2 = a[1:2, :]

    # f1[b, i] = a1 . h[b, i]  (sublane-oriented)
    f1 = jnp.sum(h * a1, axis=-1, keepdims=True)        # (Bblk, N, 1)
    # f2[b, j] = a2 . h[b, j]  produced directly lane-oriented on the MXU.
    # NOTE (perf review #8): a merged (Bblk*N,F)@(F,2) matmul + small XLU
    # transpose could replace these Bblk M=1 pushes; deferred pending a
    # bundle-dump check that the vector-extended slot is actually binding.
    a2b = jnp.broadcast_to(a2, (Bblk, 1, F))
    f2 = lax.dot_general(a2b, h, (((2,), (2,)), ((0,), (0,))),
                         preferred_element_type=jnp.float32)   # (Bblk, 1, N)

    # Row max hoisted out of the (N, N) tile (perf review #2): LeakyReLU is
    # monotone increasing, so max_j e[b,i,:] = leakyrelu(f1[b,i] + max_j f2[b,:]).
    f2_max = jnp.max(f2, axis=-1, keepdims=True)        # (Bblk, 1, 1)
    e_max = f1 + f2_max                                 # (Bblk, N, 1)
    e_max = jnp.where(e_max > 0, e_max, alpha * e_max)

    s = f1 + f2                                         # (Bblk, N, N)
    e = jnp.where(s > 0, s, alpha * s)                  # LeakyReLU
    p = jnp.exp(e - e_max)                              # stable softmax numerator
    row_sum = jnp.sum(p, axis=-1, keepdims=True)        # (Bblk, N, 1)

    # TODO(synk): attention dropout (F.dropout) skipped — eval-mode semantics.
    # TODO(synk): flash-style query-axis tiling for large N so e/p never
    # materialize as full (N, N) f32 tiles (needed well before N~2048 on v7x).

    hp = jnp.einsum('bij,bjf->bif',
                    p.astype(mxu_dtype), h.astype(mxu_dtype),
                    preferred_element_type=jnp.float32)  # (Bblk, N, F)

    # Deferred softmax normalization: N*F multiplies instead of N*N divides.
    inv = pl.reciprocal(row_sum, approx=approx_recip)    # exact by default

    beta = beta_ref[0]                                   # scalar from SMEM
    z = hp * inv + beta * h
    out = jnp.where(z > 0, z, jnp.exp(z) - 1.0)          # ELU(alpha=1)
    out = out.astype(out_ref.dtype)

    if flat_out:
        # Lane-dense (Bblk, 1, N*F) output slab (perf review #1): the HBM
        # writeback DMA sees a >=128-lane minor dim instead of F=32.  Written
        # as N static lane-slices (well-supported ops only); densifying the
        # vst themselves is the item-9 layout refactor and is deferred.
        for j in range(N):
            out_ref[:, 0, j * F:(j + 1) * F] = out[:, j, :]
    else:
        out_ref[...] = out


def _vmem_budget_and_limit():
    """Generation-aware VMEM numbers (perf review #3)."""
    cap = 64 * _MIB                       # conservative fallback (v7x-sized)
    try:
        cap = int(pltpu.get_tpu_info().vmem_capacity_bytes)
    except Exception:
        pass
    # Leave headroom for compiler scratch; never exceed 96 MiB even on the
    # 128 MiB parts (v5e/v6e) and stay well inside v7x's 64 MiB.
    limit = min(max(cap - 16 * _MIB, 32 * _MIB), 96 * _MIB)
    budget = (3 * limit) // 4             # target for the per-step working set
    return budget, limit


def _pick_batch_block(B, N, C, F, *, x_bytes, mxu_bytes, budget_bytes):
    """Largest divisor of B whose per-step working set fits the budget, while
    keeping >= 2 grid steps (v7x dual-TC + DMA overlap, perf review #4) and a
    sublane-legal 2-D x block."""
    f32 = 4
    per_b = (2 * N * C * x_bytes          # x block, double-buffered
             + N * F * f32                # h
             + 2 * N * N * f32            # logits + softmax numerator
             + 2 * N * F * f32            # hp + pre-store out temp
             + 2 * N * F * f32)           # out block, double-buffered
    if mxu_bytes < f32:                   # low-precision copies fed to the MXU
        per_b += (N * C + N * N + N * F) * mxu_bytes
    if per_b > budget_bytes:
        raise NotImplementedError(
            "TODO(synk): flash-style query-axis tiling needed — one batch "
            "element's (N, N) attention tile exceeds the VMEM budget")

    min_steps = 2 if B >= 2 else 1
    divisors = [d for d in range(1, B + 1) if B % d == 0]
    legal = [d for d in divisors if (d * N) % 8 == 0 or d == B]
    good = [d for d in legal
            if d * per_b <= budget_bytes and (B // d) >= min_steps]
    if good:
        return max(good)
    fits = [d for d in legal if d * per_b <= budget_bytes]
    return max(fits) if fits else min(legal)


def bgat_forward(x, W, a, beta, alpha, *, batch_block=None,
                 mxu_dtype=jnp.float32, approx_reciprocal=False):
    """BGATLayer forward (eval mode).

    mxu_dtype=jnp.bfloat16 halves the MXU cost and the streamed x/W DMA bytes
    on every generation (v5e/v6e/v7x all support bf16 MXU inputs) while
    keeping f32 accumulation (~1e-3 rel error); default is exact f32.
    """
    B, N, C = x.shape
    Cw, F = W.shape
    if Cw != C:
        raise ValueError(f"W has in_features={Cw}, expected {C}")
    if a.size != 2 * F:
        raise ValueError("`a` must have 2*out_features elements")
    # Note: the PyTorch module's .view trick additionally requires C == F.

    a2d = jnp.asarray(a).reshape(2, F).astype(jnp.float32)      # rows [a1, a2]
    beta1d = jnp.asarray(beta).reshape(1).astype(jnp.float32)   # SMEM scalar

    budget, vmem_limit = _vmem_budget_and_limit()
    use_lowp = jnp.dtype(mxu_dtype) != jnp.dtype(jnp.float32)
    x_bytes = jnp.dtype(mxu_dtype).itemsize if use_lowp else jnp.dtype(x.dtype).itemsize
    bblk = batch_block or _pick_batch_block(
        B, N, C, F, x_bytes=x_bytes, mxu_bytes=jnp.dtype(mxu_dtype).itemsize,
        budget_bytes=budget)
    if B % bblk:
        raise ValueError("batch_block must divide the batch size")
    grid = (B // bblk,)

    # Cast streamed operands once in the wrapper (halves the x DMA and its
    # double buffer when running the MXU in bf16 — perf review v5e item).
    if use_lowp:
        x_in = x.astype(mxu_dtype)
        w_in = jnp.asarray(W).astype(mxu_dtype)
    else:
        x_in = x
        w_in = jnp.asarray(W)
    x2d = x_in.reshape(B * N, C)     # collapse (B, N) outside the kernel (free)

    flat_out = (N * F) % 128 == 0 and N <= 128
    if flat_out:
        out_shape = jax.ShapeDtypeStruct((B, 1, N * F), x.dtype)
        out_spec = pl.BlockSpec((bblk, 1, N * F), lambda b: (b, 0, 0))
    else:
        out_shape = jax.ShapeDtypeStruct((B, N, F), x.dtype)
        out_spec = pl.BlockSpec((bblk, N, F), lambda b: (b, 0, 0))

    kernel = functools.partial(
        bgat_kernel, alpha=alpha, n_nodes=N, mxu_dtype=mxu_dtype,
        flat_out=flat_out, approx_recip=approx_reciprocal)

    out = pl.pallas_call(
        kernel,
        out_shape=out_shape,
        grid=grid,
        in_specs=[
            pl.BlockSpec((bblk * N, C), lambda b: (b, 0)),          # x (2-D)
            pl.BlockSpec((C, F), lambda b: (0, 0)),                 # W
            pl.BlockSpec((2, F), lambda b: (0, 0)),                 # a
            pl.BlockSpec(memory_space=pltpu.MemorySpace.SMEM),      # beta
        ],
        out_specs=out_spec,
        compiler_params=pltpu.CompilerParams(
            dimension_semantics=("parallel",),
            vmem_limit_bytes=vmem_limit),
    )(x2d, w_in, a2d, beta1d)

    return out.reshape(B, N, F)      # free XLA reshape of contiguous dims


def ref_forward(x, W, a, beta, alpha):
    """Pure-JAX reference mirroring the PyTorch forward (eval mode)."""
    h = x @ W                                   # (B, N, F)
    F = W.shape[1]
    f1 = h @ a[:F, :]                           # (B, N, 1)
    f2 = h @ a[F:, :]                           # (B, N, 1)
    e = f1 + jnp.swapaxes(f2, 1, 2)             # (B, N, N)
    e = jnp.where(e > 0, e, alpha * e)
    att = jax.nn.softmax(e, axis=-1)
    hp = jnp.einsum('bij,bjf->bif', att, h)
    z = hp + beta * h
    return jnp.where(z > 0, z, jnp.exp(z) - 1.0)


if __name__ == "__main__":
    B, N = 2, 8
    in_features = out_features = 32
    alpha = 0.2
    dropout = 0.5  # unused at inference

    key = jax.random.PRNGKey(0)
    kx, kw, ka = jax.random.split(key, 3)

    # Deterministic xavier_uniform(gain=1.414) init, as in the module __init__.
    gain = 1.414
    bw = gain * math.sqrt(6.0 / (in_features + out_features))
    W = jax.random.uniform(kw, (in_features, out_features), jnp.float32, -bw, bw)
    ba = gain * math.sqrt(6.0 / (2 * out_features + 1))
    a = jax.random.uniform(ka, (2 * out_features, 1), jnp.float32, -ba, ba)
    beta = jnp.ones((1,), jnp.float32)

    x = jax.random.normal(kx, (B, N, in_features), jnp.float32)

    out = bgat_forward(x, W, a, beta, alpha)
    jax.block_until_ready(out)

    ref = ref_forward(x, W, a, beta[0], alpha)
    assert out.shape == (B, N, out_features)
    # Exact f32 path with exact reciprocal: only accumulation-order noise.
    assert jnp.allclose(out, ref, atol=1e-4, rtol=1e-4), "mismatch vs reference"

    print("KERNEL_OK")
</pallas_src>

<mosaic_0001>
module attributes {stable_mosaic.version = 11 : i64} {
  func.func @bgat_kernel(%arg0: i32, %arg1: memref<8x32xf32, #tpu.memory_space<vmem>>, %arg2: memref<32x32xf32, #tpu.memory_space<vmem>>, %arg3: memref<2x32xf32, #tpu.memory_space<vmem>>, %arg4: memref<1xf32, #tpu.memory_space<smem>>, %arg5: memref<1x1x256xf32, #tpu.memory_space<vmem>>) attributes {dimension_semantics = [#tpu.dimension_semantics<parallel>], iteration_bounds = array<i64: 2>, scalar_prefetch = 0 : i64, scratch_operands = 0 : i64, tpu.core_type = #tpu.core_type<tc>, window_params = [{transform_indices = @transform_0, window_bounds = array<i64: 8, 32>}, {pipeline_mode = #tpu.pipeline_mode<synchronous>, transform_indices = @transform_1, window_bounds = array<i64: 32, 32>}, {pipeline_mode = #tpu.pipeline_mode<synchronous>, transform_indices = @transform_2, window_bounds = array<i64: 2, 32>}, {transform_indices = @transform_3, window_bounds = array<i64: 1>}, {transform_indices = @transform_4, window_bounds = array<i64: 1, 1, 256>}]} {
    %c0 = arith.constant 0 : index
    %c0_0 = arith.constant 0 : index
    %0 = vector.load %arg1[%c0, %c0_0] : memref<8x32xf32, #tpu.memory_space<vmem>>, vector<8x32xf32>
    %c0_1 = arith.constant 0 : index
    %c0_2 = arith.constant 0 : index
    %1 = vector.load %arg2[%c0_1, %c0_2] : memref<32x32xf32, #tpu.memory_space<vmem>>, vector<32x32xf32>
    %cst = arith.constant dense<0.000000e+00> : vector<8x32xf32>
    %2 = tpu.matmul %0, %1, %cst {dimension_numbers = #tpu.dot_dimension_numbers<[1], [0], [0], [1], [0, 0, 1, 1], [], []>} : vector<8x32xf32>, vector<32x32xf32>, vector<8x32xf32> -> vector<8x32xf32>
    %3 = vector.shape_cast %2 : vector<8x32xf32> to vector<1x8x32xf32>
    %c0_3 = arith.constant 0 : index
    %c0_4 = arith.constant 0 : index
    %4 = vector.load %arg3[%c0_3, %c0_4] : memref<2x32xf32, #tpu.memory_space<vmem>>, vector<2x32xf32>
    %5 = vector.extract_strided_slice %4 {offsets = [0, 0], sizes = [1, 32], strides = [1, 1]} : vector<2x32xf32> to vector<1x32xf32>
    %6 = vector.extract_strided_slice %4 {offsets = [1, 0], sizes = [1, 32], strides = [1, 1]} : vector<2x32xf32> to vector<1x32xf32>
    %7 = vector.shape_cast %5 : vector<1x32xf32> to vector<1x1x32xf32>
    %8 = vector.broadcast %7 : vector<1x1x32xf32> to vector<1x8x32xf32>
    %9 = arith.mulf %3, %8 : vector<1x8x32xf32>
    %cst_5 = arith.constant dense<0.000000e+00> : vector<1x8xf32>
    %10 = vector.multi_reduction <add>, %9, %cst_5 [2] : vector<1x8x32xf32> to vector<1x8xf32>
    %11 = vector.shape_cast %10 : vector<1x8xf32> to vector<1x8x1xf32>
    %12 = vector.shape_cast %6 : vector<1x32xf32> to vector<1x1x32xf32>
    %cst_6 = arith.constant dense<0.000000e+00> : vector<1x1x8xf32>
    %13 = tpu.matmul %12, %3, %cst_6 {dimension_numbers = #tpu.dot_dimension_numbers<[2], [2], [1], [1], [0, 0, 0, 1, 1, 1], [0], [0]>} : vector<1x1x32xf32>, vector<1x8x32xf32>, vector<1x1x8xf32> -> vector<1x1x8xf32>
    %cst_7 = arith.constant dense<0xFF800000> : vector<1x1xf32>
    %14 = vector.multi_reduction <maximumf>, %13, %cst_7 [2] : vector<1x1x8xf32> to vector<1x1xf32>
    %15 = vector.shape_cast %14 : vector<1x1xf32> to vector<1x1x1xf32>
    %16 = vector.broadcast %15 : vector<1x1x1xf32> to vector<1x8x1xf32>
    %17 = arith.addf %11, %16 : vector<1x8x1xf32>
    %cst_8 = arith.constant 0.000000e+00 : f32
    %18 = vector.broadcast %cst_8 : f32 to vector<1x8x1xf32>
    %19 = arith.cmpf ogt, %17, %18 : vector<1x8x1xf32>
    %cst_9 = arith.constant 2.000000e-01 : f32
    %20 = vector.broadcast %cst_9 : f32 to vector<1x8x1xf32>
    %21 = arith.mulf %20, %17 : vector<1x8x1xf32>
    %22 = arith.select %19, %17, %21 : vector<1x8x1xi1>, vector<1x8x1xf32>
    %23 = vector.broadcast %11 : vector<1x8x1xf32> to vector<1x8x8xf32>
    %24 = vector.broadcast %13 : vector<1x1x8xf32> to vector<1x8x8xf32>
    %25 = arith.addf %23, %24 : vector<1x8x8xf32>
    %cst_10 = arith.constant 0.000000e+00 : f32
    %26 = vector.broadcast %cst_10 : f32 to vector<1x8x8xf32>
    %27 = arith.cmpf ogt, %25, %26 : vector<1x8x8xf32>
    %cst_11 = arith.constant 2.000000e-01 : f32
    %28 = vector.broadcast %cst_11 : f32 to vector<1x8x8xf32>
    %29 = arith.mulf %28, %25 : vector<1x8x8xf32>
    %30 = arith.select %27, %25, %29 : vector<1x8x8xi1>, vector<1x8x8xf32>
    %31 = vector.broadcast %22 : vector<1x8x1xf32> to vector<1x8x8xf32>
    %32 = arith.subf %30, %31 : vector<1x8x8xf32>
    %33 = math.exp %32 : vector<1x8x8xf32>
    %cst_12 = arith.constant dense<0.000000e+00> : vector<1x8xf32>
    %34 = vector.multi_reduction <add>, %33, %cst_12 [2] : vector<1x8x8xf32> to vector<1x8xf32>
    %35 = vector.shape_cast %34 : vector<1x8xf32> to vector<1x8x1xf32>
    "tpu.trace_start"() <{level = 10 : i32, message = "bij,bjf->bif"}> : () -> ()
    %cst_13 = arith.constant dense<0.000000e+00> : vector<1x8x32xf32>
    %36 = tpu.matmul %33, %3, %cst_13 {dimension_numbers = #tpu.dot_dimension_numbers<[2], [1], [1], [2], [0, 0, 0, 1, 1, 2], [0], [0]>} : vector<1x8x8xf32>, vector<1x8x32xf32>, vector<1x8x32xf32> -> vector<1x8x32xf32>
    "tpu.trace_stop"() : () -> ()
    %37 = tpu.reciprocal %35 : vector<1x8x1xf32> -> vector<1x8x1xf32>
    %c0_14 = arith.constant 0 : index
    %38 = memref.load %arg4[%c0_14] : memref<1xf32, #tpu.memory_space<smem>>
    %39 = vector.broadcast %37 : vector<1x8x1xf32> to vector<1x8x32xf32>
    %40 = arith.mulf %36, %39 : vector<1x8x32xf32>
    %41 = vector.broadcast %38 : f32 to vector<1x8x32xf32>
    %42 = arith.mulf %41, %3 : vector<1x8x32xf32>
    %43 = arith.addf %40, %42 : vector<1x8x32xf32>
    %cst_15 = arith.constant 0.000000e+00 : f32
    %44 = vector.broadcast %cst_15 : f32 to vector<1x8x32xf32>
    %45 = arith.cmpf ogt, %43, %44 : vector<1x8x32xf32>
    %46 = math.exp %43 : vector<1x8x32xf32>
    %cst_16 = arith.constant 1.000000e+00 : f32
    %47 = vector.broadcast %cst_16 : f32 to vector<1x8x32xf32>
    %48 = arith.subf %46, %47 : vector<1x8x32xf32>
    %49 = arith.select %45, %43, %48 : vector<1x8x32xi1>, vector<1x8x32xf32>
    %50 = vector.extract_strided_slice %49 {offsets = [0, 0, 0], sizes = [1, 1, 32], strides = [1, 1, 1]} : vector<1x8x32xf32> to vector<1x1x32xf32>
    %51 = vector.shape_cast %50 : vector<1x1x32xf32> to vector<1x32xf32>
    %c0_17 = arith.constant 0 : index
    %c0_18 = arith.constant 0 : index
    %c0_19 = arith.constant 0 : index
    %52 = vector.load %arg5[%c0_17, %c0_18, %c0_19] : memref<1x1x256xf32, #tpu.memory_space<vmem>>, vector<1x1x32xf32>
    %53 = vector.shape_cast %52 : vector<1x1x32xf32> to vector<1x32xf32>
    %54 = vector.shape_cast %51 : vector<1x32xf32> to vector<1x1x32xf32>
    tpu.vector_store %arg5[%c0_17, %c0_18, %c0_19], %54 {strides = array<i32>} : memref<1x1x256xf32, #tpu.memory_space<vmem>>, vector<1x1x32xf32>,
    %55 = vector.extract_strided_slice %49 {offsets = [0, 1, 0], sizes = [1, 1, 32], strides = [1, 1, 1]} : vector<1x8x32xf32> to vector<1x1x32xf32>
    %56 = vector.shape_cast %55 : vector<1x1x32xf32> to vector<1x32xf32>
    %c0_20 = arith.constant 0 : index
    %c0_21 = arith.constant 0 : index
    %c32 = arith.constant 32 : index
    %57 = vector.load %arg5[%c0_20, %c0_21, %c32] : memref<1x1x256xf32, #tpu.memory_space<vmem>>, vector<1x1x32xf32>
    %58 = vector.shape_cast %57 : vector<1x1x32xf32> to vector<1x32xf32>
    %59 = vector.shape_cast %56 : vector<1x32xf32> to vector<1x1x32xf32>
    tpu.vector_store %arg5[%c0_20, %c0_21, %c32], %59 {strides = array<i32>} : memref<1x1x256xf32, #tpu.memory_space<vmem>>, vector<1x1x32xf32>,
    %60 = vector.extract_strided_slice %49 {offsets = [0, 2, 0], sizes = [1, 1, 32], strides = [1, 1, 1]} : vector<1x8x32xf32> to vector<1x1x32xf32>
    %61 = vector.shape_cast %60 : vector<1x1x32xf32> to vector<1x32xf32>
    %c0_22 = arith.constant 0 : index
    %c0_23 = arith.constant 0 : index
    %c64 = arith.constant 64 : index
    %62 = vector.load %arg5[%c0_22, %c0_23, %c64] : memref<1x1x256xf32, #tpu.memory_space<vmem>>, vector<1x1x32xf32>
    %63 = vector.shape_cast %62 : vector<1x1x32xf32> to vector<1x32xf32>
    %64 = vector.shape_cast %61 : vector<1x32xf32> to vector<1x1x32xf32>
    tpu.vector_store %arg5[%c0_22, %c0_23, %c64], %64 {strides = array<i32>} : memref<1x1x256xf32, #tpu.memory_space<vmem>>, vector<1x1x32xf32>,
    %65 = vector.extract_strided_slice %49 {offsets = [0, 3, 0], sizes = [1, 1, 32], strides = [1, 1, 1]} : vector<1x8x32xf32> to vector<1x1x32xf32>
    %66 = vector.shape_cast %65 : vector<1x1x32xf32> to vector<1x32xf32>
    %c0_24 = arith.constant 0 : index
    %c0_25 = arith.constant 0 : index
    %c96 = arith.constant 96 : index
    %67 = vector.load %arg5[%c0_24, %c0_25, %c96] : memref<1x1x256xf32, #tpu.memory_space<vmem>>, vector<1x1x32xf32>
    %68 = vector.shape_cast %67 : vector<1x1x32xf32> to vector<1x32xf32>
    %69 = vector.shape_cast %66 : vector<1x32xf32> to vector<1x1x32xf32>
    tpu.vector_store %arg5[%c0_24, %c0_25, %c96], %69 {strides = array<i32>} : memref<1x1x256xf32, #tpu.memory_space<vmem>>, vector<1x1x32xf32>,
    %70 = vector.extract_strided_slice %49 {offsets = [0, 4, 0], sizes = [1, 1, 32], strides = [1, 1, 1]} : vector<1x8x32xf32> to vector<1x1x32xf32>
    %71 = vector.shape_cast %70 : vector<1x1x32xf32> to vector<1x32xf32>
    %c0_26 = arith.constant 0 : index
    %c0_27 = arith.constant 0 : index
    %c128 = arith.constant 128 : index
    %72 = vector.load %arg5[%c0_26, %c0_27, %c128] : memref<1x1x256xf32, #tpu.memory_space<vmem>>, vector<1x1x32xf32>
    %73 = vector.shape_cast %72 : vector<1x1x32xf32> to vector<1x32xf32>
    %74 = vector.shape_cast %71 : vector<1x32xf32> to vector<1x1x32xf32>
    tpu.vector_store %arg5[%c0_26, %c0_27, %c128], %74 {strides = array<i32>} : memref<1x1x256xf32, #tpu.memory_space<vmem>>, vector<1x1x32xf32>,
    %75 = vector.extract_strided_slice %49 {offsets = [0, 5, 0], sizes = [1, 1, 32], strides = [1, 1, 1]} : vector<1x8x32xf32> to vector<1x1x32xf32>
    %76 = vector.shape_cast %75 : vector<1x1x32xf32> to vector<1x32xf32>
    %c0_28 = arith.constant 0 : index
    %c0_29 = arith.constant 0 : index
    %c160 = arith.constant 160 : index
    %77 = vector.load %arg5[%c0_28, %c0_29, %c160] : memref<1x1x256xf32, #tpu.memory_space<vmem>>, vector<1x1x32xf32>
    %78 = vector.shape_cast %77 : vector<1x1x32xf32> to vector<1x32xf32>
    %79 = vector.shape_cast %76 : vector<1x32xf32> to vector<1x1x32xf32>
    tpu.vector_store %arg5[%c0_28, %c0_29, %c160], %79 {strides = array<i32>} : memref<1x1x256xf32, #tpu.memory_space<vmem>>, vector<1x1x32xf32>,
    %80 = vector.extract_strided_slice %49 {offsets = [0, 6, 0], sizes = [1, 1, 32], strides = [1, 1, 1]} : vector<1x8x32xf32> to vector<1x1x32xf32>
    %81 = vector.shape_cast %80 : vector<1x1x32xf32> to vector<1x32xf32>
    %c0_30 = arith.constant 0 : index
    %c0_31 = arith.constant 0 : index
    %c192 = arith.constant 192 : index
    %82 = vector.load %arg5[%c0_30, %c0_31, %c192] : memref<1x1x256xf32, #tpu.memory_space<vmem>>, vector<1x1x32xf32>
    %83 = vector.shape_cast %82 : vector<1x1x32xf32> to vector<1x32xf32>
    %84 = vector.shape_cast %81 : vector<1x32xf32> to vector<1x1x32xf32>
    tpu.vector_store %arg5[%c0_30, %c0_31, %c192], %84 {strides = array<i32>} : memref<1x1x256xf32, #tpu.memory_space<vmem>>, vector<1x1x32xf32>,
    %85 = vector.extract_strided_slice %49 {offsets = [0, 7, 0], sizes = [1, 1, 32], strides = [1, 1, 1]} : vector<1x8x32xf32> to vector<1x1x32xf32>
    %86 = vector.shape_cast %85 : vector<1x1x32xf32> to vector<1x32xf32>
    %c0_32 = arith.constant 0 : index
    %c0_33 = arith.constant 0 : index
    %c224 = arith.constant 224 : index
    %87 = vector.load %arg5[%c0_32, %c0_33, %c224] : memref<1x1x256xf32, #tpu.memory_space<vmem>>, vector<1x1x32xf32>
    %88 = vector.shape_cast %87 : vector<1x1x32xf32> to vector<1x32xf32>
    %89 = vector.shape_cast %86 : vector<1x32xf32> to vector<1x1x32xf32>
    tpu.vector_store %arg5[%c0_32, %c0_33, %c224], %89 {strides = array<i32>} : memref<1x1x256xf32, #tpu.memory_space<vmem>>, vector<1x1x32xf32>,
    return
  }
  func.func @transform_0(%arg0: i32) -> (i32, i32) {
    %c0_i32 = arith.constant 0 : i32
    %c0_i32_0 = arith.constant 0 : i32
    return %arg0, %c0_i32 : i32, i32
  }
  func.func @transform_1(%arg0: i32) -> (i32, i32) {
    %c0_i32 = arith.constant 0 : i32
    %c0_i32_0 = arith.constant 0 : i32
    %c0_i32_1 = arith.constant 0 : i32
    return %c0_i32, %c0_i32_0 : i32, i32
  }
  func.func @transform_2(%arg0: i32) -> (i32, i32) {
    %c0_i32 = arith.constant 0 : i32
    %c0_i32_0 = arith.constant 0 : i32
    %c0_i32_1 = arith.constant 0 : i32
    return %c0_i32, %c0_i32_0 : i32, i32
  }
  func.func @transform_3(%arg0: i32) -> i32 {
    %c0_i32 = arith.constant 0 : i32
    %c0_i32_0 = arith.constant 0 : i32
    return %c0_i32 : i32
  }
  func.func @transform_4(%arg0: i32) -> (i32, i32, i32) {
    %c0_i32 = arith.constant 0 : i32
    %c0_i32_0 = arith.constant 0 : i32
    %c0_i32_1 = arith.constant 0 : i32
    return %arg0, %c0_i32, %c0_i32_0 : i32, i32, i32
  }
}

</mosaic_0001>

<bundles_post_ra>
// kernel: tpu_custom_call.1
= control target key start
LH: loop header
LB: loop body
LE: loop exit
PB: predicated region body
PF: predicated region fallthrough
CT: control target
= control target key end

     0   :  { %s1235_s0 = inlined_call_operand.hbm [shape: f32[16,32], index: 0, kind: input, shape index: {}]   ;;  %s1236_s1 = inlined_call_operand.hbm [shape: f32[32,32], index: 1, kind: input, shape index: {}]   ;;  %s1237_s2 = inlined_call_operand.vmem [shape: f32[2,32], index: 2, kind: input, shape index: {}]   ;;  %s1238_s3 = inlined_call_operand.<no memory space> [shape: f32[1], index: 3, kind: input, shape index: {}]   ;;  %s1239_s4 = inlined_call_operand.hbm [shape: f32[2,1,256], index: 4, kind: output, shape index: {}]  }
   0x1   :  { %9 = sst [smem:[#allocation2]] %s1238_s3 }
   0x2   :  { %10 = vsyncpa [#allocation4], 0 }
   0x3   :  { %12 = vsyncpa [#allocation4 + $0x1], 0 }
   0x4   :  { %13 = vsyncpa [#allocation7], 0 }
   0x5   :  { %14 = vsyncpa [#allocation5], 0 }
   0x6   :  { %16 = vsyncpa [#allocation5 + $0x1], 0  ;;  %s989_s17 = smov 0   ;;  %s991_s18 = smov 0  }
   0x7   :  { %s993_s19 = smov 0   ;;  %s995_s20 = smov 0  }
   0x8 LB: > { %s1010_s3 = sadd.s32 4294967295, %s947_s20   ;;  %s690_s21 = sadd.s32 4294967294, %s947_s20   ;;  %s947_s20 = sphi %s995_s20, %s1265_s20   ;;  %s943_s19 = sphi %s993_s19, %s1264_s19   ;;  %s939_s18 = sphi %s991_s18, %s1263_s18   ;;  %s935_s17 = sphi %s989_s17, %s1262_s17  }
   0x9   : > { %p42_p0 = scmp.ne.s32.totalorder %s939_s18, %s935_s17  ;;  %p1240_p1 = scmp.eq.s32.totalorder %s1010_s3, 0 }
   0xa   : > { %p135_p3 = scmp.eq.s32.totalorder %s690_s21, 1  ;;  %p691_p5 = scmp.ge.s32.totalorder %s947_s20, 1 }
   0xb   : > { %p1019_p4 = por %p1240_p1, %p42_p0  ;;  %p142_p7 = scmp.lt.s32.totalorder %s947_s20, 3 }
   0xc   : > { %p1024_p6 = por %p135_p3, %p42_p0  ;;  %s949_s25 = smov [#allocation6]  }
   0xd   : > { %s1243_s22 = scalar_select %p1019_p4, 1, 0 }
   0xe   : > { %s1244_s23 = scalar_select %p1024_p6, 1, 0 }
   0xf   : > { %p1029_p8 = pnand %p691_p5, %p142_p7  ;;  %s154_s26 = sshll.u32 %s949_s25, 4  ;;  %s1033_s26 = int_to_ptr.vmem [resolvable:$true] %s154_s26 }
  0x10   : > { %s1045_s28 = sadd.s32 1, %s947_s20   ;;  %s29_s29 = sadd.s32 1, %s943_s19 }
  0x11   : > { %s1245_s24 = scalar_select %p1029_p8, 1, 0 }
  0x12   : > { %p755_p9 = pneg %p1029_p8  ;;  %s26_s30 = ssub.s32 %s947_s20, %s1045_s28 }
  0x13   : > { %s819_s7 = scalar_lea.hbm %s1236_s1, 512 }
  0x14   : > { %p1040_p11 = pnand %p755_p9, %p1240_p1  ;;  %p820_p12 = scmp.ne.s32.totalorder %s1236_s1, %s819_s7 }
  0x15   : > { %p826_p5 = scmp.lt.u32.totalorder %s819_s7, %s1236_s1 }
  0x16   : > { %p821_p13 = pneg %p1040_p11 }
  0x18   : > { %p822_p0 = pnand %p821_p13, %p820_p12 }
  0x1a   : > { %p823_p3 = pneg %p822_p0 }
  0x1c   : > { %p828_p7 = pnand %p826_p5, %p823_p3 }
  0x1e   : > { %831 = shalt.err (!%p828_p7)
}
  0x1f   : > { %s832_s12 = scalar_lea.vmem %s1033_s26, 512  ;;  %p840_p2 = scmp.lt.s32.totalorder %s1033_s26, %s1033_s26 }
  0x20   : > { %p833_p9 = scmp.ne.s32.totalorder %s1033_s26, %s832_s12  ;;  %p841_p6 = scmp.lt.s32.totalorder %s832_s12, %s832_s12 }
  0x22   : > { %p835_p10 = pnand %p833_p9, %p821_p13  ;;  %p842_p4 = por %p841_p6, %p840_p2 }
  0x24   : > { %p836_p1 = pneg %p835_p10 }
  0x26   : > { %p843_p8 = pnand %p842_p4, %p836_p1 }
  0x28   : > { %846 = shalt.err (!%p843_p8)
}
  0x29   : > { %s950_s13 = smov 128   ;;  %s951_s14 = smov 8  }
  0x2a   : > { %758 = dma.hbm_to_vmem [thread:$0]  (!%p1040_p11), %s1236_s1, 512, %s1033_s26, [#allocation7], %s950_s13, %s950_s13, %s951_s14  }
  0x2b   : > { %p27_p2 = scmp.eq.s32.totalorder %s26_s30, 0  ;;  %p36_p1 = scmp.ne.s32.totalorder %s943_s19, %s939_s18 }
  0x2c   : > { %p37_p4 = scmp.eq.s32.totalorder %s947_s20, 0  ;;  %p768_p6 = scmp.lt.s32.totalorder %s947_s20, 2 }
  0x2d   : > { %s1076_s21 = scalar_select %p27_p2, %s943_s19, %s29_s29  }
  0x2e   : > { %p38_p8 = por %p37_p4, %p36_p1  ;;  %p1247_p10 = scmp.eq.s32.totalorder %s1010_s3, 1 }
  0x2f   : > { %s174_s5 = sand.u32 1, %s943_s19   ;;  %s695_s6 = sshll.u32 %s947_s20, 7 }
  0x30   : > { %p1080_p12 = por %p1247_p10, %p36_p1  ;;  %s694_s7 = sshll.u32 %s174_s5, 3 }
  0x31   : > { %s1089_s9 = scalar_lea.hbm %s1235_s0, %s695_s6  ;;  %s178_s26 = scalar_lea.vmem [#allocation3], %s694_s7 }
  0x32   : > { %s185_s29 = sshll.u32 %s178_s26, 4  ;;  %p1091_p11 = pnand %p768_p6, %p38_p8  ;;  %s1095_s29 = int_to_ptr.vmem [resolvable:$true] %s185_s29 }
  0x33   : > { %s175_s10 = scalar_lea.sflag [#allocation4], %s174_s5  ;;  %s847_s11 = scalar_lea.hbm %s1089_s9, 128 }
  0x34   : > { %p848_p13 = scmp.ne.s32.totalorder %s1089_s9, %s847_s11  ;;  %p849_p0 = pneg %p1091_p11 }
  0x35   : > { %s852_s14 = scalar_lea.hbm %s1235_s0, 256  ;;  %p853_p7 = scmp.lt.u32.totalorder %s1089_s9, %s1235_s0 }
  0x36   : > { %p850_p3 = pnand %p849_p0, %p848_p13  ;;  %p854_p9 = scmp.lt.u32.totalorder %s852_s14, %s847_s11 }
  0x37   : > { %p856_p1 = scmp.lt.u32.totalorder %s847_s11, %s1089_s9 }
  0x38   : > { %p851_p5 = pneg %p850_p3  ;;  %p855_p2 = por %p854_p9, %p853_p7 }
  0x3a   : > { %p857_p4 = por %p856_p1, %p855_p2 }
  0x3c   : > { %p858_p6 = pnand %p857_p4, %p851_p5 }
  0x3e   : > { %861 = shalt.err (!%p858_p6)
}
  0x3f   : > { %s862_s5 = scalar_lea.vmem %s1095_s29, 128  ;;  %s952_s6 = smov [#allocation3]  }
  0x40   : > { %p863_p8 = scmp.ne.s32.totalorder %s1095_s29, %s862_s5  ;;  %s867_s7 = sshll.u32 %s952_s6, 4  ;;  %s868_s7 = int_to_ptr.vmem [resolvable:$false] %s867_s7 }
  0x41   : > { %s869_s27 = scalar_lea.vmem %s868_s7, 256  ;;  %p870_p3 = scmp.lt.s32.totalorder %s1095_s29, %s868_s7 }
  0x42   : > { %p865_p10 = pnand %p863_p8, %p849_p0  ;;  %p871_p7 = scmp.lt.s32.totalorder %s869_s27, %s862_s5 }
  0x44   : > { %p866_p13 = pneg %p865_p10  ;;  %p872_p9 = por %p871_p7, %p870_p3 }
  0x46   : > { %p873_p2 = pnand %p872_p9, %p866_p13 }
  0x48   : > { %876 = shalt.err (!%p873_p2)
}
  0x49   : > { %762 = dma.hbm_to_vmem [thread:$0]  (!%p1091_p11), %s1089_s9, 128, %s1095_s29, %s175_s10  }
  0x4a   : > { %p1250_p5 = scmp.ne.s32.totalorder %s1245_s24, 0 }
  0x4b   : > { %s1125_s8 = sand.u32 (!%p1250_p5), 1, %s939_s18   ;;  %p1251_p0 = scmp.ne.s32.totalorder (!%p1250_p5), %s1243_s22, 0 }
  0x4c   : > { %194 = sbr.rel (%p1250_p5) target bundleno = 1070 (0x42e), region = 36  ;;  %s697_s26 = sshll.u32 (!%p1250_p5), %s1125_s8, 3 }
  0x4d   : > { %s197_s11 = scalar_lea.sflag (!%p1250_p5), [#allocation4], %s1125_s8  ;;  %s200_s12 = scalar_lea.vmem (!%p1250_p5), [#allocation3], %s697_s26 }
  0x53   : > { %922 = dma.done.wait (%p1251_p0), %s197_s11, 128  }
  0x54   : > { %924 = vsyncadd (%p1251_p0), %s197_s11, 4294967168  ;;  %p1252_p1 = scmp.eq.s32.totalorder %s1010_s3, 0 }
  0x56   : > { %926 = dma.done.wait (%p1252_p1), [#allocation7], 512   ;;  %p1253_p11 = pmov %p1252_p1 }
  0x57   : > { %v953_v0 = vmov 0.0|0.0   ;;  %vm954_vm0 = vmmov 0   ;;  %v955_v1 = vmov 0.0   ;;  %v230_v2 = vld [vmem:[#allocation6] sm:$0xff]  ;;  %v231_v3 = vld [vmem:[#allocation6 + $0x8] sm:$0xff]  ;;  %v232_v4 = vld [vmem:[#allocation6 + $0x10] sm:$0xff]  ;;  %v309_v9 = vlaneseq }
  0x58   : > { %928 = vsyncadd (%p1253_p11), [#allocation7], 4294966784  ;;  %741 = vmatprep.subr.bf16.mxu0 %v953_v0  ;;  %728 = vmatprep.mubr.msk.f32.mxu0 %vm954_vm0, %v955_v1  ;;  %v742_v5 = vpack.c.bf16 %v231_v3, %v230_v2  ;;  %v233_v6 = vld [vmem:[#allocation6 + $0x18] sm:$0xff]  ;;  %vm234_vm1 = vcmask 261120   ;;  %v308_v12 = vld [vmem:[%s1237_s2] sm:$0x3] }
  0x59   : > { %731 = vmatprep.subr.mxu1 %v955_v1  ;;  %733 = vmatprep.mubr.msk.f32.mxu1 %vm954_vm0, %v955_v1  ;;  %v745_v7 = vpack.c.bf16 %v233_v6, %v232_v4  ;;  %v229_v8 = vld [vmem:[%s200_s12] sm:$0xff]  ;;  %v310_v10 = vshrl.u32 %v309_v9, 7  ;;  %v318_v15 = vrot.slane %v308_v12, 1  ;;  %vm394_vm2 = vcmask 57344   ;;  %s495_s9 = sld [smem:[#allocation2]]  ;;  %s699_s29 = sshll.u32 %s1125_s8, 1 }
  0x5a   : > { %743 = vmatpush3.bf16.msra.mxu0 %v742_v5  ;;  %vm417_vm5 = vcmask 64512   ;;  %v956_v45 = vmov 1966171168   ;;  %vm1150_vm6 = vcmp.lt.s32.totalorder %v309_v9, 32  ;;  %s1154_s30 = scalar_lea.vmem [#allocation8], %s699_s29  ;;  %s957_s10 = smov 32  }
  0x5b   : > { %744 = vmatprep.subr.bf16.mxu0 %v953_v0  ;;  %v311_v11 = vsub.s32 0, %v310_v10  ;;  %v512_v46 = vunpack.c.l.s4 %v956_v45  ;;  %s958_s13 = smov 64   ;;  %s959_s14 = smov 96   ;;  %vm536_vm8 = vcmp.ge.s32.totalorder %v309_v9, 32  ;;  %vm537_vm9 = vcmp.lt.s32.totalorder %v309_v9, 64 }
  0x5c   : > { %vm538_vm10 = vmand %vm536_vm8, %vm537_vm9  ;;  %vm1165_vm11 = vcmp.ge.s32.totalorder %v309_v9, 64  ;;  %vm1170_vm12 = vcmp.lt.s32.totalorder %v309_v9, 96  ;;  %vm552_vm14 = vcmp.ge.s32.totalorder %v309_v9, 96  ;;  %vm553_vm15 = vcmp.lt.s32.totalorder %v309_v9, 128  ;;  %s710_s15 = sshll.u32 %s1010_s3, 5  ;;  %s610_s16 = sshll.u32 %s1154_s30, 4  ;;  %s1192_s16 = int_to_ptr.vmem [resolvable:$true] %s610_s16 }
  0x5d   : > { %v312_v13 = vrot.slane %v308_v12, %v311_v11  ;;  %v513_v47 = vunpack.c.0.s8 %v512_v46  ;;  %vm546_vm13 = vmand %vm1165_vm11, %vm1170_vm12  ;;  %s1190_s7 = scalar_lea.hbm %s1239_s4, %s710_s15  ;;  %s596_s27 = scalar_lea.sflag [#allocation5], %s1125_s8 }
  0x5e   : > { %746 = vmatpush3.bf16.msra.mxu0 %v745_v7  ;;  %s877_s26 = scalar_lea.vmem %s1192_s16, 32  ;;  %s960_s3 = smov [#allocation8]  }
  0x5f   : > { %v497_v37 = vstv %s495_s9  ;;  %v516_v49 = vsub.s32 %v513_v47, %v310_v10  ;;  %p878_p4 = scmp.ne.s32.totalorder %s1192_s16, %s877_s26  ;;  %s881_s11 = sshll.u32 %s960_s3, 4  ;;  %s882_s11 = int_to_ptr.vmem [resolvable:$false] %s881_s11 }
  0x60   : > { %s883_s12 = scalar_lea.vmem %s882_s11, 64  ;;  %p884_p10 = scmp.lt.s32.totalorder %s1192_s16, %s882_s11 }
  0x61   : > { %729 = vmatmul.mubr.msk.f32.vlgmr.msra.gmra.mrb[0].mxu0 %vm234_vm1, %v229_v8  ;;  %p879_p6 = pnand %p878_p4, %p1080_p12  ;;  %p885_p13 = scmp.lt.s32.totalorder %s883_s12, %s877_s26 }
  0x63   : > { %p880_p8 = pneg %p879_p6  ;;  %p886_p3 = por %p885_p13, %p884_p10 }
  0x65   : > { %p887_p7 = pnand %p886_p3, %p880_p8 }
 0x134   : > { %v304_v14 = vpop.f32.mrb[0].mxu0 }
 0x135   : > { %v730_v16 = vpop.f32.mrb[1].mxu0  ;;  %732 = vmatpush3.xpose.msk.msra.mxu1 %vm234_vm1, %v304_v14  ;;  %v313_v17 = vmul.f32 %v312_v13, %v304_v14  ;;  %v498_v41 = vmul.f32 %v497_v37, %v304_v14 }
 0x136   : > { %736 = vmatprep.subr.mxu1 %v955_v1 }
 0x137   : > { %v314_v21 = vsel %vm234_vm1, %v313_v17, 0.0 }
 0x138   : > { %734 = vmatmul.mubr.msk.f32.vlgmr.msra.gmra.mrb[0].mxu1 %vm234_vm1, %v318_v15 }
 0x139   : > { %737 = vmatpush3.msra.mxu1 %v304_v14  ;;  %738 = vmatprep.mubr.msk.f32.mxu1 %vm954_vm0, %v955_v1  ;;  %vm554_vm0 = vmand %vm552_vm14, %vm553_vm15 }
 0x20b   : > { %v390_v18 = vpop.f32.mrb[0].mxu1 }
 0x20c   : > { %v735_v19 = vpop.f32.mrb[1].mxu1  ;;  %v395_v20 = vsel %vm394_vm2, %v390_v18, -inf  ;;  %v409_v23 = vrot.slane %v390_v18, %v311_v11 }
 0x20d   : > { %396 = vmax.xlane.f32.xlu0 %v395_v20 }
 0x211   : > { %315 = vadd.xlane.f32.xlu0 %v314_v21 }
 0x29a   : > { %v397_v22 = vpop.xlane.xlu0 %396 }
 0x29b   : > { %v401_v24 = vrot.slane %v397_v22, %v311_v11 }
 0x29e   : > { %v316_v25 = vpop.xlane.xlu0 %315 }
 0x29f   : > { %v402_v26 = vadd.f32 %v401_v24, %v316_v25  ;;  %v410_v27 = vadd.f32 %v409_v23, %v316_v25 }
 0x2a1   : > { %vm403_vm3 = vcmp.gt.f32.partialorder %v402_v26, 0.0  ;;  %v404_v28 = vmul.f32 0.2, %v402_v26  ;;  %vm411_vm4 = vcmp.gt.f32.partialorder %v410_v27, 0.0  ;;  %v412_v29 = vmul.f32 0.2, %v410_v27 }
 0x2a3   : > { %v405_v30 = vsel %vm403_vm3, %v402_v26, %v404_v28  ;;  %v413_v31 = vsel %vm411_vm4, %v410_v27, %v412_v29 }
 0x2a4   : > { %v414_v32 = vsub.f32 %v413_v31, %v405_v30 }
 0x2a6   : > { %v415_v33 = vmul.f32 1.442695, %v414_v32 }
 0x2a8   : > { %813 = vpow2.f32 %v415_v33 }
 0x2b2   : > { %v814_v34 = vpop.eup %813 }
 0x2b3   : > { %739 = vmatmul.mubr.msk.f32.vlgmr.msra.gmra.mrb[2].mxu1 %vm417_vm5, %v814_v34  ;;  %v418_v35 = vsel %vm417_vm5, %v814_v34, 0.0 }
 0x2b4   : > { %419 = vadd.xlane.f32.xlu1 %v418_v35 }
 0x341   : > { %v420_v36 = vpop.xlane.xlu1 %419 }
 0x342   : > { %815 = vrcp.f32 %v420_v36 }
 0x34c   : > { %v816_v38 = vpop.eup %815 }
 0x386   : > { %v490_v39 = vpop.f32.mrb[2].mxu1 }
 0x387   : > { %v496_v40 = vmul.f32 %v816_v38, %v490_v39  ;;  %v740_v42 = vpop.f32.mrb[3].mxu1 }
 0x389   : > { %v499_v43 = vadd.f32 %v498_v41, %v496_v40 }
 0x38b   : > { %v501_v44 = vmul.f32 1.442695, %v499_v43  ;;  %vm500_vm7 = vcmp.gt.f32.partialorder %v499_v43, 0.0 }
 0x38d   : > { %817 = vpow2.f32 %v501_v44 }
 0x397   : > { %v818_v48 = vpop.eup %817 }
 0x398   : > { %v704_v50 = vadd.f32 -1.0, %v818_v48 }
 0x39a   : > { %v504_v52 = vsel %vm500_vm7, %v499_v43, %v704_v50 }
 0x39b   : > { %509 = vst.msk [vmem:[%s1154_s30] sm:$0x1] %vm1150_vm6, %v504_v52  ;;  %v556_v53 = vcombine.high %v504_v52, %v504_v52  ;;  %v517_v54 = vrot.slane %v504_v52, %v516_v49 }
 0x39d   : > { %v518_v55 = vcombine.high %v517_v54, %v517_v54  ;;  %v563_v56 = vrot.slane %v556_v53, %v516_v49  ;;  %v525_v59 = vrot.slane %v517_v54, %v516_v49 }
 0x39f   : > { %v532_v57 = vrot.slane %v518_v55, %v516_v49  ;;  %v573_v58 = vcombine.high %v563_v56, %v563_v56  ;;  %v570_v60 = vrot.slane %v563_v56, %v516_v49  ;;  %v540_v62 = vcombine.high %v525_v59, %v525_v59 }
 0x3a1   : > { %533 = vrot.lane.b32.xlu1 %v532_v57, %s957_s10  ;;  %v580_v61 = vrot.slane %v573_v58, %v516_v49  ;;  %572 = vst.msk [vmem:[%s1154_s30 + $0x1] sm:$0x1] %vm1150_vm6, %v570_v60  ;;  %v585_v0 = vcombine.high %v570_v60, %v570_v60  ;;  %v548_v1 = vcombine.high %v532_v57, %v532_v57 }
 0x3a3   : > { %581 = vrot.lane.b32.xlu0 %v580_v61, %s957_s10  ;;  %v590_v63 = vcombine.high %v580_v61, %v580_v61 }
 0x3a5   : > { %541 = vrot.lane.b32.xlu1 %v540_v62, %s958_s13 }
 0x3a7   : > { %591 = vrot.lane.b32.xlu0 %v590_v63, %s959_s14 }
 0x3a9   : > { %586 = vrot.lane.b32.xlu1 %v585_v0, %s958_s13 }
 0x3ad   : > { %549 = vrot.lane.b32.xlu1 %v548_v1, %s959_s14 }
 0x413   : > { %v534_v4 = vpop.permute.xlu1 %533 }
 0x414   : > { %539 = vst.msk [vmem:[%s1154_s30] sm:$0x1] %vm538_vm10, %v534_v4 }
 0x415   : > { %v582_v5 = vpop.permute.xlu0 %581 }
 0x416   : > { %584 = vst.msk [vmem:[%s1154_s30 + $0x1] sm:$0x1] %vm538_vm10, %v582_v5 }
 0x417   : > { %v542_v6 = vpop.permute.xlu1 %541 }
 0x418   : > { %547 = vst.msk [vmem:[%s1154_s30] sm:$0x1] %vm546_vm13, %v542_v6 }
 0x419   : > { %v592_v8 = vpop.permute.xlu0 %591 }
 0x41b   : > { %v587_v7 = vpop.permute.xlu1 %586 }
 0x41c   : > { %589 = vst.msk [vmem:[%s1154_s30 + $0x1] sm:$0x1] %vm546_vm13, %v587_v7 }
 0x41d   : > { %594 = vst.msk [vmem:[%s1154_s30 + $0x1] sm:$0x1] %vm554_vm0, %v592_v8 }
 0x41f   : > { %v550_v9 = vpop.permute.xlu1 %549 }
 0x420   : > { %555 = vst.msk [vmem:[%s1154_s30] sm:$0x1] %vm554_vm0, %v550_v9 }
 0x421   : > { %890 = shalt.err (!%p887_p7)
}
 0x422   : > { %s891_s8 = scalar_lea.hbm %s1190_s7, 32  ;;  %s895_s9 = scalar_lea.hbm %s1239_s4, 64 }
 0x423   : > { %p892_p9 = scmp.ne.s32.totalorder %s1190_s7, %s891_s8  ;;  %p896_p0 = scmp.lt.u32.totalorder %s1190_s7, %s1239_s4 }
 0x424   : > { %p897_p1 = scmp.lt.u32.totalorder %s895_s9, %s891_s8  ;;  %p899_p4 = scmp.lt.u32.totalorder %s891_s8, %s1190_s7 }
 0x425   : > { %p893_p2 = pnand %p892_p9, %p1080_p12 }
 0x426   : > { %p898_p11 = por %p897_p1, %p896_p0 }
 0x427   : > { %p894_p5 = pneg %p893_p2 }
 0x428   : > { %p900_p6 = por %p899_p4, %p898_p11 }
 0x42a   : > { %p901_p8 = pnand %p900_p6, %p894_p5 }
 0x42c   : > { %904 = shalt.err (!%p901_p8)
}
 0x42d   : > { %753 = dma.vmem_to_hbm [thread:$0]  (%p1080_p12), %s1192_s16, 32, %s1190_s7, %s596_s27  }
 0x42e PF: > { %s622_s10 = sand.u32 1, %s935_s17   ;;  %p1260_p10 = scmp.ne.s32.totalorder %s1244_s23, 0 }
 0x42f   : > { %p1261_p13 = scmp.ge.s32.totalorder %s947_s20, 2  ;;  %s623_s13 = scalar_lea.sflag [#allocation5], %s622_s10 }
 0x431   : > { %p764_p3 = pnand %p1261_p13, %p1260_p10 }
 0x433   : > { %930 = dma.done.wait (!%p764_p3), %s623_s13, 32  }
 0x434   : > { %932 = vsyncadd (!%p764_p3), %s623_s13, 4294967264  ;;  %p19_p7 = scmp.ge.s32.totalorder %s1045_s28, 4   ;;  %s1262_s17 = smov %s939_s18 }
 0x435   : > { %s1263_s18 = smov %s943_s19  ;;  %s1264_s19 = smov %s1076_s21 }
 0x436   : > { %s1265_s20 = smov %s1045_s28  ;;  %21 = sbr.rel (!%p19_p7) target bundleno = 8 (0x8), region = 85 }
 0x43d   :  { %628 = vsyncpa [#allocation4], 1 }
 0x43e   :  { %630 = vsyncpa [#allocation4 + $0x1], 1 }
 0x43f   :  { %631 = vsyncpa [#allocation7], 1 }
 0x440   :  { %632 = vsyncpa [#allocation5], 1 }
 0x441   :  { %634 = vsyncpa [#allocation5 + $0x1], 1 }

</bundles_post_ra>
